<compile_context>
chip_gen: v5e
topology: v5e:2x2
jax: 0.10.0
libtpu: 0.0.40
codegen_flags: <defaults>
</compile_context>

<pallas_src>
import functools
import math

import jax
import jax.numpy as jnp
from jax.experimental import pallas as pl
from jax.experimental.pallas import tpu as pltpu

CURVATURE = 1.0          # Poincare ball curvature c
MIN_NORM = 1e-15         # clamp_min used for norms / denominators
ATANH_EPS = 1e-5         # artanh input clamp
PROJ_EPS = 1e-3          # ball projection epsilon


# ---------------- hyperbolic math: pure-JAX reference (original formulation) --------

def _artanh(x):
    x = jnp.clip(x, -1.0 + ATANH_EPS, 1.0 - ATANH_EPS)
    return 0.5 * jnp.log((1.0 + x) / (1.0 - x))


def _project(x, c):
    sqrt_c = jnp.sqrt(c)
    norm = jnp.maximum(jnp.sqrt(jnp.sum(x * x, axis=-1, keepdims=True)), MIN_NORM)
    maxnorm = (1.0 - PROJ_EPS) / sqrt_c
    clipped = x / norm * maxnorm
    return jnp.where(norm > maxnorm, clipped, x)


def _expmap0(v, c):
    sqrt_c = jnp.sqrt(c)
    v_norm = jnp.maximum(jnp.sqrt(jnp.sum(v * v, axis=-1, keepdims=True)), MIN_NORM)
    return jnp.tanh(sqrt_c * v_norm) * v / (sqrt_c * v_norm)


def _mobius_matvec(x, w, c):
    sqrt_c = jnp.sqrt(c)
    x_norm = jnp.maximum(jnp.sqrt(jnp.sum(x * x, axis=-1, keepdims=True)), MIN_NORM)
    mx = jnp.dot(x, w, preferred_element_type=jnp.float32)
    mx_norm = jnp.maximum(jnp.sqrt(jnp.sum(mx * mx, axis=-1, keepdims=True)), MIN_NORM)
    res = jnp.tanh(mx_norm / x_norm * _artanh(sqrt_c * x_norm)) * mx / (mx_norm * sqrt_c)
    zero_row = jnp.all(mx == 0.0, axis=-1, keepdims=True)
    return jnp.where(zero_row, jnp.zeros_like(res), res)


def _mobius_add(x, y, c):
    x2 = jnp.sum(x * x, axis=-1, keepdims=True)
    y2 = jnp.sum(y * y, axis=-1, keepdims=True)
    xy = jnp.sum(x * y, axis=-1, keepdims=True)
    num = (1.0 + 2.0 * c * xy + c * y2) * x + (1.0 - c * x2) * y
    den = 1.0 + 2.0 * c * xy + c * c * x2 * y2
    return num / jnp.maximum(den, MIN_NORM)


def _poincare_linear_ref(x, w, b, c):
    res = _project(_mobius_matvec(x, w, c), c)
    bias = _project(_expmap0(b, c), c)
    res = _mobius_add(res, bias, c)
    return _project(res, c)


def poincare_feed_forward_ref(x, w1, b1, w2, b2):
    c = jnp.float32(CURVATURE)
    B, S, d_model = x.shape
    x2d = x.reshape(B * S, d_model)
    h = _poincare_linear_ref(x2d, w1, b1.reshape(1, -1), c)
    y = _poincare_linear_ref(h, w2, b2.reshape(1, -1), c)
    return y.reshape(B, S, d_model)


# ---------------- in-kernel fused Poincare linear (divide-free wide path) ------------

def _fused_poincare_linear(x, x_sq, w, bias, bias_sq, c, sqrt_c, use_bf16):
    """One PoincareLinear layer on a (tm, d_in) tile.

    x:       (tm, d_in) f32 points on the ball (zero-padded lanes allowed).
    x_sq:    (tm, 1)   pre-clamp sum of squares of x (carried between layers).
    w:       (d_in, d_out) weights (bf16 if use_bf16, else f32).
    bias:    (1, d_out) f32 = project(expmap0(b)) (hoisted to the wrapper).
    bias_sq: scalar f32 = sum(bias^2) (hoisted to the wrapper, read from SMEM).
    Returns (y, y_sq). All wide (tm, d) ops are multiplies/adds; divides/rsqrt live
    on (tm, 1) norm columns.
    """
    min_sq = jnp.float32(MIN_NORM * MIN_NORM)
    maxnorm = (1.0 - PROJ_EPS) / sqrt_c
    inv_sqrt_c = 1.0 / sqrt_c

    # ---- Mobius matrix-vector product (MXU) --------------------------------------
    if use_bf16:
        mx = jnp.dot(x.astype(jnp.bfloat16), w, preferred_element_type=jnp.float32)
    else:
        mx = jnp.dot(x, w, preferred_element_type=jnp.float32)
    mx_sq = jnp.sum(mx * mx, axis=-1, keepdims=True)          # (tm,1)
    zero_row = mx_sq == 0.0                                    # pre-clamp; ~all(mx==0)

    x_sq_c = jnp.maximum(x_sq, min_sq)
    mx_sq_c = jnp.maximum(mx_sq, min_sq)
    inv_x_norm = jax.lax.rsqrt(x_sq_c)                         # (tm,1) on EUP
    inv_mx_norm = jax.lax.rsqrt(mx_sq_c)
    x_norm = x_sq_c * inv_x_norm
    mx_norm = mx_sq_c * inv_mx_norm
    scale = (jnp.tanh((mx_norm * inv_x_norm) * _artanh(sqrt_c * x_norm))
             * inv_mx_norm * inv_sqrt_c)                       # (tm,1)
    scale = jnp.where(zero_row, 0.0, scale)
    res = mx * scale                                           # single wide mul
    res_sq = mx_sq * (scale * scale)                           # sum(res^2) w/o wide reduce

    # ---- projection onto the ball --------------------------------------------------
    res_sq_c = jnp.maximum(res_sq, min_sq)
    inv_res_norm = jax.lax.rsqrt(res_sq_c)
    res_norm = res_sq_c * inv_res_norm
    clip = res_norm > maxnorm
    pfac = jnp.where(clip, inv_res_norm * maxnorm, 1.0)        # (tm,1)
    res = res * pfac
    res_sq = jnp.where(clip, maxnorm * maxnorm, res_sq)

    # ---- Mobius add of the (hoisted, already-on-ball) bias --------------------------
    xy = jnp.sum(res * bias, axis=-1, keepdims=True)           # (tm,1)
    two_c_xy = (2.0 * c) * xy
    ca = 1.0 + two_c_xy + c * bias_sq
    cb = 1.0 - c * res_sq
    den = 1.0 + two_c_xy + (c * c) * res_sq * bias_sq
    inv_den = 1.0 / jnp.maximum(den, MIN_NORM)                 # exact, (tm,1) column
    y = (ca * inv_den) * res + (cb * inv_den) * bias           # 2 wide muls + add

    # ---- final projection -----------------------------------------------------------
    y_sq = jnp.sum(y * y, axis=-1, keepdims=True)
    y_sq_c = jnp.maximum(y_sq, min_sq)
    inv_y_norm = jax.lax.rsqrt(y_sq_c)
    y_norm = y_sq_c * inv_y_norm
    clip2 = y_norm > maxnorm
    pfac2 = jnp.where(clip2, inv_y_norm * maxnorm, 1.0)
    y = y * pfac2
    y_sq = jnp.where(clip2, maxnorm * maxnorm, y_sq)
    return y, y_sq


def poincare_ffn_kernel(x_ref, w1_ref, b1_ref, w2_ref, b2_ref, bsq_ref, o_ref, *, use_bf16):
    c = float(CURVATURE)
    sqrt_c = math.sqrt(CURVATURE)
    x = x_ref[...]                                             # (tm, dm_p) f32
    x_sq = jnp.sum(x * x, axis=-1, keepdims=True)
    h, h_sq = _fused_poincare_linear(x, x_sq, w1_ref[...], b1_ref[...], bsq_ref[0],
                                     c, sqrt_c, use_bf16)
    y, _ = _fused_poincare_linear(h, h_sq, w2_ref[...], b2_ref[...], bsq_ref[1],
                                  c, sqrt_c, use_bf16)
    o_ref[...] = y


# ---------------- wrapper helpers ------------------------------------------------------

def _round_up(v, m):
    return ((v + m - 1) // m) * m


def _pad_cast2d(a, rows, cols, dtype):
    a = a.astype(dtype)
    if a.shape == (rows, cols):
        return a
    return jnp.zeros((rows, cols), dtype).at[:a.shape[0], :a.shape[1]].set(a)


def _probe_copy_kernel(x_ref, o_ref):
    o_ref[...] = x_ref[...]


@functools.lru_cache(maxsize=None)
def _single_buffer_supported():
    """One-time eager probe: does this build accept pipeline_mode=pl.Buffered(1)?

    Runs outside jit, so a lowering failure here is caught and we fall back to the
    default (double-buffered) weight specs — robust even when callers jit the wrapper.
    """
    try:
        fn = pl.pallas_call(
            _probe_copy_kernel,
            out_shape=jax.ShapeDtypeStruct((16, 128), jnp.float32),
            grid=(2,),
            in_specs=[pl.BlockSpec((8, 128), lambda i: (0, 0),
                                   pipeline_mode=pl.Buffered(1))],
            out_specs=pl.BlockSpec((8, 128), lambda i: (i, 0)),
        )
        jax.block_until_ready(fn(jnp.zeros((8, 128), jnp.float32)))
        return True
    except Exception:
        return False


def _choose_tile_and_vmem(n_rows, dm_p, df_p, tm_target, weight_elt_bytes, weight_buffers):
    """Pick the token tile tm and scoped-VMEM limit from an explicit, dtype-aware budget."""
    try:
        vmem_cap = int(pltpu.get_tpu_info().vmem_capacity_bytes)
    except Exception:
        vmem_cap = 64 * 1024 * 1024           # conservative: v7x per-core VMEM
    scoped_limit = max(32 << 20, min(vmem_cap - (8 << 20), 120 << 20))

    weight_bytes = 2 * dm_p * df_p * weight_elt_bytes + (dm_p + df_p) * 4   # resident W + f32 biases
    per_row = 4 * (8 * dm_p + 5 * df_p)       # dbl-buffered x/out + f32 temps + bf16 copies
    headroom = 6 << 20                        # compiler internal scratch etc.
    avail = scoped_limit - weight_buffers * weight_bytes - headroom

    if avail < 8 * per_row:
        # TODO(synk): weights too large to keep resident in VMEM; a d_ffn-tiled
        # streamed-weight variant (emit_pipeline over w1 column / w2 row blocks with a
        # (tm, d_ffn) accumulator) would be needed — clamp to the minimum tile instead
        # of faking it.
        tm = 8
    else:
        tm = min(tm_target, avail // per_row)
        tm = max(8, (tm // 8) * 8)

    # Keep >= ~4 grid steps when possible so the pipeline overlaps DMA/compute and the
    # second TensorCore (v7x megacore) gets work from dimension_semantics=("parallel",).
    tm = min(tm, max(8, _round_up(pl.cdiv(n_rows, 4), 8)))

    vmem_limit = min(scoped_limit,
                     max(32 << 20, weight_buffers * weight_bytes + tm * per_row + (8 << 20)))
    return int(tm), int(vmem_limit)


# ---------------- main wrapper ---------------------------------------------------------

def _poincare_ffn_impl(x, w1, b1, w2, b2, *, tm_target, use_bf16_matmul,
                       single_buffer_weights):
    B, S, d_model = x.shape
    d_in, d_ffn = w1.shape
    assert d_in == d_model and w2.shape == (d_ffn, d_model)
    c = jnp.float32(CURVATURE)

    N = B * S
    dm_p = _round_up(d_model, 128)            # lane-dense feature dims
    df_p = _round_up(d_ffn, 128)
    w_dtype = jnp.bfloat16 if use_bf16_matmul else jnp.float32
    w_bytes = 2 if use_bf16_matmul else 4
    weight_buffers = 1 if single_buffer_weights else 2
    tm, vmem_limit = _choose_tile_and_vmem(N, dm_p, df_p, tm_target, w_bytes, weight_buffers)

    # Hoisted constant bias path: project(expmap0(b)) and sum(bias^2), once per call.
    bias1 = _project(_expmap0(b1.reshape(1, -1).astype(jnp.float32), c), c)
    bias2 = _project(_expmap0(b2.reshape(1, -1).astype(jnp.float32), c), c)
    bias_sq = jnp.stack([jnp.sum(bias1 * bias1),
                         jnp.sum(bias2 * bias2)]).astype(jnp.float32)      # f32[2] -> SMEM

    # Activations: only pad features when needed (zero-padding is exact for norm math);
    # ragged rows are handled by the pl.cdiv grid (rows are independent).
    x2d = x.reshape(N, d_model).astype(jnp.float32)
    if dm_p != d_model:
        x2d = jnp.zeros((N, dm_p), jnp.float32).at[:, :d_model].set(x2d)

    # Weights: pad + cast in the wrapper (bf16 halves the resident VMEM footprint).
    w1_p = _pad_cast2d(w1, dm_p, df_p, w_dtype)
    w2_p = _pad_cast2d(w2, df_p, dm_p, w_dtype)
    b1_p = _pad_cast2d(bias1, 1, df_p, jnp.float32)
    b2_p = _pad_cast2d(bias2, 1, dm_p, jnp.float32)

    grid = (pl.cdiv(N, tm),)
    kernel = functools.partial(poincare_ffn_kernel, use_bf16=use_bf16_matmul)
    cost = pl.CostEstimate(
        flops=int(4 * N * dm_p * df_p),
        transcendentals=int(12 * N),
        bytes_accessed=int(8 * N * dm_p + 2 * w_bytes * dm_p * df_p + 4 * (dm_p + df_p)),
    )

    def const_spec(shape):
        if single_buffer_weights:
            return pl.BlockSpec(shape, lambda i: (0, 0), pipeline_mode=pl.Buffered(1))
        return pl.BlockSpec(shape, lambda i: (0, 0))

    fn = pl.pallas_call(
        kernel,
        out_shape=jax.ShapeDtypeStruct((N, dm_p), jnp.float32),
        grid=grid,
        in_specs=[
            pl.BlockSpec((tm, dm_p), lambda i: (i, 0)),        # x tile (double-buffered)
            const_spec((dm_p, df_p)),                          # resident weights/biases
            const_spec((1, df_p)),
            const_spec((df_p, dm_p)),
            const_spec((1, dm_p)),
            pl.BlockSpec(memory_space=pltpu.MemorySpace.SMEM), # hoisted bias_sq scalars
        ],
        out_specs=pl.BlockSpec((tm, dm_p), lambda i: (i, 0)),
        compiler_params=pltpu.CompilerParams(
            dimension_semantics=("parallel",),
            vmem_limit_bytes=vmem_limit,
        ),
        cost_estimate=cost,
    )
    out = fn(x2d, w1_p, b1_p, w2_p, b2_p, bias_sq)
    if dm_p != d_model:
        out = out[:, :d_model]
    return out.reshape(B, S, d_model)


_poincare_ffn_jit = jax.jit(
    _poincare_ffn_impl,
    static_argnames=("tm_target", "use_bf16_matmul", "single_buffer_weights"))


def poincare_feed_forward(x, w1, b1, w2, b2, *, tm_target=512, use_bf16_matmul=True):
    """x: (B, S, model_dim) points on the Poincare ball.
    w1: (model_dim, ffn_dim), w2: (ffn_dim, model_dim) (PyTorch weights transposed).
    bf16 MXU inputs by default (f32 accumulation, f32 hyperbolic math); pass
    use_bf16_matmul=False for a full-f32 matmul path."""
    single = _single_buffer_supported()       # eager one-time probe, jit-safe
    return _poincare_ffn_jit(x, w1, b1, w2, b2, tm_target=tm_target,
                             use_bf16_matmul=use_bf16_matmul,
                             single_buffer_weights=single)


# ---------------- main ---------------------------------------------------------------

if __name__ == "__main__":
    B, S = 2, 8
    model_dim, ffn_dim = 32, 64

    key = jax.random.PRNGKey(0)
    k_x, k_w1, k_b1, k_w2, k_b2 = jax.random.split(key, 5)

    # Input: points on the Poincare ball (project to be safe).
    x = 0.1 * jax.random.normal(k_x, (B, S, model_dim), dtype=jnp.float32)
    x = _project(x, jnp.float32(CURVATURE))

    # PoincareLinear params.  PyTorch weight is (out, in); we pass the transpose
    # (in, out) so the kernel computes x @ W^T directly.
    w1 = (jax.random.uniform(k_w1, (model_dim, ffn_dim), dtype=jnp.float32,
                             minval=-1.0, maxval=1.0) / jnp.sqrt(model_dim))
    b1 = 0.01 * jax.random.normal(k_b1, (ffn_dim,), dtype=jnp.float32)
    w2 = (jax.random.uniform(k_w2, (ffn_dim, model_dim), dtype=jnp.float32,
                             minval=-1.0, maxval=1.0) / jnp.sqrt(ffn_dim))
    b2 = 0.01 * jax.random.normal(k_b2, (model_dim,), dtype=jnp.float32)

    ref = jax.block_until_ready(poincare_feed_forward_ref(x, w1, b1, w2, b2))

    # Default path: bf16 MXU inputs, f32 accumulation + f32 hyperbolic math.
    out = jax.block_until_ready(poincare_feed_forward(x, w1, b1, w2, b2))
    assert out.shape == (B, S, model_dim)
    assert jnp.allclose(out, ref, rtol=5e-3, atol=5e-3), "bf16-matmul path mismatch vs reference"

    # Full-f32 matmul path: tight tolerance check.
    out_f32 = jax.block_until_ready(
        poincare_feed_forward(x, w1, b1, w2, b2, use_bf16_matmul=False))
    assert jnp.allclose(out_f32, ref, rtol=2e-3, atol=2e-3), "f32-matmul path mismatch vs reference"

    print("KERNEL_OK")
</pallas_src>

<mosaic_0001>
module attributes {stable_mosaic.version = 11 : i64} {
  func.func @_probe_copy_kernel(%arg0: i32, %arg1: memref<8x128xf32, #tpu.memory_space<vmem>>, %arg2: memref<8x128xf32, #tpu.memory_space<vmem>>) attributes {dimension_semantics = [#tpu.dimension_semantics<arbitrary>], iteration_bounds = array<i64: 2>, scalar_prefetch = 0 : i64, scratch_operands = 0 : i64, tpu.core_type = #tpu.core_type<tc>, window_params = [{pipeline_mode = #tpu.pipeline_mode<synchronous>, transform_indices = @transform_0, window_bounds = array<i64: 8, 128>}, {transform_indices = @transform_1, window_bounds = array<i64: 8, 128>}]} {
    %c0 = arith.constant 0 : index
    %c0_0 = arith.constant 0 : index
    %0 = vector.load %arg1[%c0, %c0_0] : memref<8x128xf32, #tpu.memory_space<vmem>>, vector<8x128xf32>
    %c0_1 = arith.constant 0 : index
    %c0_2 = arith.constant 0 : index
    %1 = vector.load %arg2[%c0_1, %c0_2] : memref<8x128xf32, #tpu.memory_space<vmem>>, vector<8x128xf32>
    tpu.vector_store %arg2[%c0_1, %c0_2], %0 {strides = array<i32>} : memref<8x128xf32, #tpu.memory_space<vmem>>, vector<8x128xf32>,
    return
  }
  func.func @transform_0(%arg0: i32) -> (i32, i32) {
    %c0_i32 = arith.constant 0 : i32
    %c0_i32_0 = arith.constant 0 : i32
    %c0_i32_1 = arith.constant 0 : i32
    return %c0_i32, %c0_i32_0 : i32, i32
  }
  func.func @transform_1(%arg0: i32) -> (i32, i32) {
    %c0_i32 = arith.constant 0 : i32
    %c0_i32_0 = arith.constant 0 : i32
    return %arg0, %c0_i32 : i32, i32
  }
}

module attributes {stable_mosaic.version = 11 : i64} {
  func.func @poincare_ffn_kernel(%arg0: i32, %arg1: memref<8x128xf32, #tpu.memory_space<vmem>>, %arg2: memref<128x128xbf16, #tpu.memory_space<vmem>>, %arg3: memref<1x128xf32, #tpu.memory_space<vmem>>, %arg4: memref<128x128xbf16, #tpu.memory_space<vmem>>, %arg5: memref<1x128xf32, #tpu.memory_space<vmem>>, %arg6: memref<2xf32, #tpu.memory_space<smem>>, %arg7: memref<8x128xf32, #tpu.memory_space<vmem>>) attributes {dimension_semantics = [#tpu.dimension_semantics<parallel>], iteration_bounds = array<i64: 2>, scalar_prefetch = 0 : i64, scratch_operands = 0 : i64, tpu.core_type = #tpu.core_type<tc>, window_params = [{transform_indices = @transform_0, window_bounds = array<i64: 8, 128>}, {pipeline_mode = #tpu.pipeline_mode<synchronous>, transform_indices = @transform_1, window_bounds = array<i64: 128, 128>}, {pipeline_mode = #tpu.pipeline_mode<synchronous>, transform_indices = @transform_2, window_bounds = array<i64: 1, 128>}, {pipeline_mode = #tpu.pipeline_mode<synchronous>, transform_indices = @transform_3, window_bounds = array<i64: 128, 128>}, {pipeline_mode = #tpu.pipeline_mode<synchronous>, transform_indices = @transform_4, window_bounds = array<i64: 1, 128>}, {transform_indices = @transform_5, window_bounds = array<i64: 2>}, {transform_indices = @transform_6, window_bounds = array<i64: 8, 128>}]} {
    %c0 = arith.constant 0 : index
    %c0_0 = arith.constant 0 : index
    %0 = vector.load %arg1[%c0, %c0_0] : memref<8x128xf32, #tpu.memory_space<vmem>>, vector<8x128xf32>
    %1 = arith.mulf %0, %0 : vector<8x128xf32>
    %cst = arith.constant dense<0.000000e+00> : vector<8xf32>
    %2 = vector.multi_reduction <add>, %1, %cst [1] : vector<8x128xf32> to vector<8xf32>
    %3 = vector.shape_cast %2 : vector<8xf32> to vector<8x1xf32>
    %c0_1 = arith.constant 0 : index
    %c0_2 = arith.constant 0 : index
    %4 = vector.load %arg2[%c0_1, %c0_2] : memref<128x128xbf16, #tpu.memory_space<vmem>>, vector<128x128xbf16>
    %c0_3 = arith.constant 0 : index
    %c0_4 = arith.constant 0 : index
    %5 = vector.load %arg3[%c0_3, %c0_4] : memref<1x128xf32, #tpu.memory_space<vmem>>, vector<1x128xf32>
    %c0_5 = arith.constant 0 : index
    %6 = memref.load %arg6[%c0_5] : memref<2xf32, #tpu.memory_space<smem>>
    %7 = arith.truncf %0 : vector<8x128xf32> to vector<8x128xbf16>
    %cst_6 = arith.constant dense<0.000000e+00> : vector<8x128xf32>
    %8 = tpu.matmul %7, %4, %cst_6 {dimension_numbers = #tpu.dot_dimension_numbers<[1], [0], [0], [1], [0, 0, 1, 1], [], []>} : vector<8x128xbf16>, vector<128x128xbf16>, vector<8x128xf32> -> vector<8x128xf32>
    %9 = arith.mulf %8, %8 : vector<8x128xf32>
    %cst_7 = arith.constant dense<0.000000e+00> : vector<8xf32>
    %10 = vector.multi_reduction <add>, %9, %cst_7 [1] : vector<8x128xf32> to vector<8xf32>
    %11 = vector.shape_cast %10 : vector<8xf32> to vector<8x1xf32>
    %cst_8 = arith.constant 0.000000e+00 : f32
    %12 = vector.broadcast %cst_8 : f32 to vector<8x1xf32>
    %13 = arith.cmpf oeq, %11, %12 : vector<8x1xf32>
    %cst_9 = arith.constant 1.000000e-30 : f32
    %14 = vector.broadcast %cst_9 : f32 to vector<8x1xf32>
    %15 = arith.maximumf %3, %14 : vector<8x1xf32>
    %cst_10 = arith.constant 1.000000e-30 : f32
    %16 = vector.broadcast %cst_10 : f32 to vector<8x1xf32>
    %17 = arith.maximumf %11, %16 : vector<8x1xf32>
    %18 = math.rsqrt %15 : vector<8x1xf32>
    %19 = math.rsqrt %17 : vector<8x1xf32>
    %20 = arith.mulf %15, %18 : vector<8x1xf32>
    %21 = arith.mulf %17, %19 : vector<8x1xf32>
    %22 = arith.mulf %21, %18 : vector<8x1xf32>
    %cst_11 = arith.constant 1.000000e+00 : f32
    %23 = vector.broadcast %cst_11 : f32 to vector<8x1xf32>
    %24 = arith.mulf %23, %20 : vector<8x1xf32>
    %cst_12 = arith.constant -0.999989986 : f32
    %cst_13 = arith.constant 0.999989986 : f32
    %25 = vector.broadcast %cst_12 : f32 to vector<8x1xf32>
    %26 = arith.maximumf %25, %24 : vector<8x1xf32>
    %27 = vector.broadcast %cst_13 : f32 to vector<8x1xf32>
    %28 = arith.minimumf %27, %26 : vector<8x1xf32>
    %cst_14 = arith.constant 1.000000e+00 : f32
    %29 = vector.broadcast %cst_14 : f32 to vector<8x1xf32>
    %30 = arith.addf %29, %28 : vector<8x1xf32>
    %cst_15 = arith.constant 1.000000e+00 : f32
    %31 = vector.broadcast %cst_15 : f32 to vector<8x1xf32>
    %32 = arith.subf %31, %28 : vector<8x1xf32>
    %33 = arith.divf %30, %32 : vector<8x1xf32>
    %34 = math.log %33 : vector<8x1xf32>
    %cst_16 = arith.constant 5.000000e-01 : f32
    %35 = vector.broadcast %cst_16 : f32 to vector<8x1xf32>
    %36 = arith.mulf %35, %34 : vector<8x1xf32>
    %37 = arith.mulf %22, %36 : vector<8x1xf32>
    %38 = math.tanh %37 : vector<8x1xf32>
    %39 = arith.mulf %38, %19 : vector<8x1xf32>
    %cst_17 = arith.constant 1.000000e+00 : f32
    %40 = vector.broadcast %cst_17 : f32 to vector<8x1xf32>
    %41 = arith.mulf %39, %40 : vector<8x1xf32>
    %cst_18 = arith.constant 0.000000e+00 : f32
    %42 = vector.broadcast %cst_18 : f32 to vector<8x1xf32>
    %43 = arith.select %13, %42, %41 : vector<8x1xi1>, vector<8x1xf32>
    %44 = vector.broadcast %43 : vector<8x1xf32> to vector<8x128xf32>
    %45 = arith.mulf %8, %44 : vector<8x128xf32>
    %46 = arith.mulf %43, %43 : vector<8x1xf32>
    %47 = arith.mulf %11, %46 : vector<8x1xf32>
    %cst_19 = arith.constant 1.000000e-30 : f32
    %48 = vector.broadcast %cst_19 : f32 to vector<8x1xf32>
    %49 = arith.maximumf %47, %48 : vector<8x1xf32>
    %50 = math.rsqrt %49 : vector<8x1xf32>
    %51 = arith.mulf %49, %50 : vector<8x1xf32>
    %cst_20 = arith.constant 9.990000e-01 : f32
    %52 = vector.broadcast %cst_20 : f32 to vector<8x1xf32>
    %53 = arith.cmpf ogt, %51, %52 : vector<8x1xf32>
    %cst_21 = arith.constant 9.990000e-01 : f32
    %54 = vector.broadcast %cst_21 : f32 to vector<8x1xf32>
    %55 = arith.mulf %50, %54 : vector<8x1xf32>
    %cst_22 = arith.constant 1.000000e+00 : f32
    %56 = vector.broadcast %cst_22 : f32 to vector<8x1xf32>
    %57 = arith.select %53, %55, %56 : vector<8x1xi1>, vector<8x1xf32>
    %58 = vector.broadcast %57 : vector<8x1xf32> to vector<8x128xf32>
    %59 = arith.mulf %45, %58 : vector<8x128xf32>
    %cst_23 = arith.constant 0.998000979 : f32
    %60 = vector.broadcast %cst_23 : f32 to vector<8x1xf32>
    %61 = arith.select %53, %60, %47 : vector<8x1xi1>, vector<8x1xf32>
    %62 = vector.broadcast %5 : vector<1x128xf32> to vector<8x128xf32>
    %63 = arith.mulf %59, %62 : vector<8x128xf32>
    %cst_24 = arith.constant dense<0.000000e+00> : vector<8xf32>
    %64 = vector.multi_reduction <add>, %63, %cst_24 [1] : vector<8x128xf32> to vector<8xf32>
    %65 = vector.shape_cast %64 : vector<8xf32> to vector<8x1xf32>
    %cst_25 = arith.constant 2.000000e+00 : f32
    %66 = vector.broadcast %cst_25 : f32 to vector<8x1xf32>
    %67 = arith.mulf %66, %65 : vector<8x1xf32>
    %cst_26 = arith.constant 1.000000e+00 : f32
    %68 = vector.broadcast %cst_26 : f32 to vector<8x1xf32>
    %69 = arith.addf %68, %67 : vector<8x1xf32>
    %cst_27 = arith.constant 1.000000e+00 : f32
    %70 = arith.mulf %cst_27, %6 : f32
    %71 = vector.broadcast %70 : f32 to vector<8x1xf32>
    %72 = arith.addf %69, %71 : vector<8x1xf32>
    %cst_28 = arith.constant 1.000000e+00 : f32
    %73 = vector.broadcast %cst_28 : f32 to vector<8x1xf32>
    %74 = arith.mulf %73, %61 : vector<8x1xf32>
    %cst_29 = arith.constant 1.000000e+00 : f32
    %75 = vector.broadcast %cst_29 : f32 to vector<8x1xf32>
    %76 = arith.subf %75, %74 : vector<8x1xf32>
    %cst_30 = arith.constant 1.000000e+00 : f32
    %77 = vector.broadcast %cst_30 : f32 to vector<8x1xf32>
    %78 = arith.addf %77, %67 : vector<8x1xf32>
    %cst_31 = arith.constant 1.000000e+00 : f32
    %79 = vector.broadcast %cst_31 : f32 to vector<8x1xf32>
    %80 = arith.mulf %79, %61 : vector<8x1xf32>
    %81 = vector.broadcast %6 : f32 to vector<8x1xf32>
    %82 = arith.mulf %80, %81 : vector<8x1xf32>
    %83 = arith.addf %78, %82 : vector<8x1xf32>
    %cst_32 = arith.constant 1.000000e-15 : f32
    %84 = vector.broadcast %cst_32 : f32 to vector<8x1xf32>
    %85 = arith.maximumf %83, %84 : vector<8x1xf32>
    %cst_33 = arith.constant 1.000000e+00 : f32
    %86 = vector.broadcast %cst_33 : f32 to vector<8x1xf32>
    %87 = arith.divf %86, %85 : vector<8x1xf32>
    %88 = arith.mulf %72, %87 : vector<8x1xf32>
    %89 = vector.broadcast %88 : vector<8x1xf32> to vector<8x128xf32>
    %90 = arith.mulf %89, %59 : vector<8x128xf32>
    %91 = arith.mulf %76, %87 : vector<8x1xf32>
    %92 = vector.broadcast %91 : vector<8x1xf32> to vector<8x128xf32>
    %93 = vector.broadcast %5 : vector<1x128xf32> to vector<8x128xf32>
    %94 = arith.mulf %92, %93 : vector<8x128xf32>
    %95 = arith.addf %90, %94 : vector<8x128xf32>
    %96 = arith.mulf %95, %95 : vector<8x128xf32>
    %cst_34 = arith.constant dense<0.000000e+00> : vector<8xf32>
    %97 = vector.multi_reduction <add>, %96, %cst_34 [1] : vector<8x128xf32> to vector<8xf32>
    %98 = vector.shape_cast %97 : vector<8xf32> to vector<8x1xf32>
    %cst_35 = arith.constant 1.000000e-30 : f32
    %99 = vector.broadcast %cst_35 : f32 to vector<8x1xf32>
    %100 = arith.maximumf %98, %99 : vector<8x1xf32>
    %101 = math.rsqrt %100 : vector<8x1xf32>
    %102 = arith.mulf %100, %101 : vector<8x1xf32>
    %cst_36 = arith.constant 9.990000e-01 : f32
    %103 = vector.broadcast %cst_36 : f32 to vector<8x1xf32>
    %104 = arith.cmpf ogt, %102, %103 : vector<8x1xf32>
    %cst_37 = arith.constant 9.990000e-01 : f32
    %105 = vector.broadcast %cst_37 : f32 to vector<8x1xf32>
    %106 = arith.mulf %101, %105 : vector<8x1xf32>
    %cst_38 = arith.constant 1.000000e+00 : f32
    %107 = vector.broadcast %cst_38 : f32 to vector<8x1xf32>
    %108 = arith.select %104, %106, %107 : vector<8x1xi1>, vector<8x1xf32>
    %109 = vector.broadcast %108 : vector<8x1xf32> to vector<8x128xf32>
    %110 = arith.mulf %95, %109 : vector<8x128xf32>
    %cst_39 = arith.constant 0.998000979 : f32
    %111 = vector.broadcast %cst_39 : f32 to vector<8x1xf32>
    %112 = arith.select %104, %111, %98 : vector<8x1xi1>, vector<8x1xf32>
    %c0_40 = arith.constant 0 : index
    %c0_41 = arith.constant 0 : index
    %113 = vector.load %arg4[%c0_40, %c0_41] : memref<128x128xbf16, #tpu.memory_space<vmem>>, vector<128x128xbf16>
    %c0_42 = arith.constant 0 : index
    %c0_43 = arith.constant 0 : index
    %114 = vector.load %arg5[%c0_42, %c0_43] : memref<1x128xf32, #tpu.memory_space<vmem>>, vector<1x128xf32>
    %c1 = arith.constant 1 : index
    %115 = memref.load %arg6[%c1] : memref<2xf32, #tpu.memory_space<smem>>
    %116 = arith.truncf %110 : vector<8x128xf32> to vector<8x128xbf16>
    %cst_44 = arith.constant dense<0.000000e+00> : vector<8x128xf32>
    %117 = tpu.matmul %116, %113, %cst_44 {dimension_numbers = #tpu.dot_dimension_numbers<[1], [0], [0], [1], [0, 0, 1, 1], [], []>} : vector<8x128xbf16>, vector<128x128xbf16>, vector<8x128xf32> -> vector<8x128xf32>
    %118 = arith.mulf %117, %117 : vector<8x128xf32>
    %cst_45 = arith.constant dense<0.000000e+00> : vector<8xf32>
    %119 = vector.multi_reduction <add>, %118, %cst_45 [1] : vector<8x128xf32> to vector<8xf32>
    %120 = vector.shape_cast %119 : vector<8xf32> to vector<8x1xf32>
    %cst_46 = arith.constant 0.000000e+00 : f32
    %121 = vector.broadcast %cst_46 : f32 to vector<8x1xf32>
    %122 = arith.cmpf oeq, %120, %121 : vector<8x1xf32>
    %cst_47 = arith.constant 1.000000e-30 : f32
    %123 = vector.broadcast %cst_47 : f32 to vector<8x1xf32>
    %124 = arith.maximumf %112, %123 : vector<8x1xf32>
    %cst_48 = arith.constant 1.000000e-30 : f32
    %125 = vector.broadcast %cst_48 : f32 to vector<8x1xf32>
    %126 = arith.maximumf %120, %125 : vector<8x1xf32>
    %127 = math.rsqrt %124 : vector<8x1xf32>
    %128 = math.rsqrt %126 : vector<8x1xf32>
    %129 = arith.mulf %124, %127 : vector<8x1xf32>
    %130 = arith.mulf %126, %128 : vector<8x1xf32>
    %131 = arith.mulf %130, %127 : vector<8x1xf32>
    %cst_49 = arith.constant 1.000000e+00 : f32
    %132 = vector.broadcast %cst_49 : f32 to vector<8x1xf32>
    %133 = arith.mulf %132, %129 : vector<8x1xf32>
    %cst_50 = arith.constant -0.999989986 : f32
    %cst_51 = arith.constant 0.999989986 : f32
    %134 = vector.broadcast %cst_50 : f32 to vector<8x1xf32>
    %135 = arith.maximumf %134, %133 : vector<8x1xf32>
    %136 = vector.broadcast %cst_51 : f32 to vector<8x1xf32>
    %137 = arith.minimumf %136, %135 : vector<8x1xf32>
    %cst_52 = arith.constant 1.000000e+00 : f32
    %138 = vector.broadcast %cst_52 : f32 to vector<8x1xf32>
    %139 = arith.addf %138, %137 : vector<8x1xf32>
    %cst_53 = arith.constant 1.000000e+00 : f32
    %140 = vector.broadcast %cst_53 : f32 to vector<8x1xf32>
    %141 = arith.subf %140, %137 : vector<8x1xf32>
    %142 = arith.divf %139, %141 : vector<8x1xf32>
    %143 = math.log %142 : vector<8x1xf32>
    %cst_54 = arith.constant 5.000000e-01 : f32
    %144 = vector.broadcast %cst_54 : f32 to vector<8x1xf32>
    %145 = arith.mulf %144, %143 : vector<8x1xf32>
    %146 = arith.mulf %131, %145 : vector<8x1xf32>
    %147 = math.tanh %146 : vector<8x1xf32>
    %148 = arith.mulf %147, %128 : vector<8x1xf32>
    %cst_55 = arith.constant 1.000000e+00 : f32
    %149 = vector.broadcast %cst_55 : f32 to vector<8x1xf32>
    %150 = arith.mulf %148, %149 : vector<8x1xf32>
    %cst_56 = arith.constant 0.000000e+00 : f32
    %151 = vector.broadcast %cst_56 : f32 to vector<8x1xf32>
    %152 = arith.select %122, %151, %150 : vector<8x1xi1>, vector<8x1xf32>
    %153 = vector.broadcast %152 : vector<8x1xf32> to vector<8x128xf32>
    %154 = arith.mulf %117, %153 : vector<8x128xf32>
    %155 = arith.mulf %152, %152 : vector<8x1xf32>
    %156 = arith.mulf %120, %155 : vector<8x1xf32>
    %cst_57 = arith.constant 1.000000e-30 : f32
    %157 = vector.broadcast %cst_57 : f32 to vector<8x1xf32>
    %158 = arith.maximumf %156, %157 : vector<8x1xf32>
    %159 = math.rsqrt %158 : vector<8x1xf32>
    %160 = arith.mulf %158, %159 : vector<8x1xf32>
    %cst_58 = arith.constant 9.990000e-01 : f32
    %161 = vector.broadcast %cst_58 : f32 to vector<8x1xf32>
    %162 = arith.cmpf ogt, %160, %161 : vector<8x1xf32>
    %cst_59 = arith.constant 9.990000e-01 : f32
    %163 = vector.broadcast %cst_59 : f32 to vector<8x1xf32>
    %164 = arith.mulf %159, %163 : vector<8x1xf32>
    %cst_60 = arith.constant 1.000000e+00 : f32
    %165 = vector.broadcast %cst_60 : f32 to vector<8x1xf32>
    %166 = arith.select %162, %164, %165 : vector<8x1xi1>, vector<8x1xf32>
    %167 = vector.broadcast %166 : vector<8x1xf32> to vector<8x128xf32>
    %168 = arith.mulf %154, %167 : vector<8x128xf32>
    %cst_61 = arith.constant 0.998000979 : f32
    %169 = vector.broadcast %cst_61 : f32 to vector<8x1xf32>
    %170 = arith.select %162, %169, %156 : vector<8x1xi1>, vector<8x1xf32>
    %171 = vector.broadcast %114 : vector<1x128xf32> to vector<8x128xf32>
    %172 = arith.mulf %168, %171 : vector<8x128xf32>
    %cst_62 = arith.constant dense<0.000000e+00> : vector<8xf32>
    %173 = vector.multi_reduction <add>, %172, %cst_62 [1] : vector<8x128xf32> to vector<8xf32>
    %174 = vector.shape_cast %173 : vector<8xf32> to vector<8x1xf32>
    %cst_63 = arith.constant 2.000000e+00 : f32
    %175 = vector.broadcast %cst_63 : f32 to vector<8x1xf32>
    %176 = arith.mulf %175, %174 : vector<8x1xf32>
    %cst_64 = arith.constant 1.000000e+00 : f32
    %177 = vector.broadcast %cst_64 : f32 to vector<8x1xf32>
    %178 = arith.addf %177, %176 : vector<8x1xf32>
    %cst_65 = arith.constant 1.000000e+00 : f32
    %179 = arith.mulf %cst_65, %115 : f32
    %180 = vector.broadcast %179 : f32 to vector<8x1xf32>
    %181 = arith.addf %178, %180 : vector<8x1xf32>
    %cst_66 = arith.constant 1.000000e+00 : f32
    %182 = vector.broadcast %cst_66 : f32 to vector<8x1xf32>
    %183 = arith.mulf %182, %170 : vector<8x1xf32>
    %cst_67 = arith.constant 1.000000e+00 : f32
    %184 = vector.broadcast %cst_67 : f32 to vector<8x1xf32>
    %185 = arith.subf %184, %183 : vector<8x1xf32>
    %cst_68 = arith.constant 1.000000e+00 : f32
    %186 = vector.broadcast %cst_68 : f32 to vector<8x1xf32>
    %187 = arith.addf %186, %176 : vector<8x1xf32>
    %cst_69 = arith.constant 1.000000e+00 : f32
    %188 = vector.broadcast %cst_69 : f32 to vector<8x1xf32>
    %189 = arith.mulf %188, %170 : vector<8x1xf32>
    %190 = vector.broadcast %115 : f32 to vector<8x1xf32>
    %191 = arith.mulf %189, %190 : vector<8x1xf32>
    %192 = arith.addf %187, %191 : vector<8x1xf32>
    %cst_70 = arith.constant 1.000000e-15 : f32
    %193 = vector.broadcast %cst_70 : f32 to vector<8x1xf32>
    %194 = arith.maximumf %192, %193 : vector<8x1xf32>
    %cst_71 = arith.constant 1.000000e+00 : f32
    %195 = vector.broadcast %cst_71 : f32 to vector<8x1xf32>
    %196 = arith.divf %195, %194 : vector<8x1xf32>
    %197 = arith.mulf %181, %196 : vector<8x1xf32>
    %198 = vector.broadcast %197 : vector<8x1xf32> to vector<8x128xf32>
    %199 = arith.mulf %198, %168 : vector<8x128xf32>
    %200 = arith.mulf %185, %196 : vector<8x1xf32>
    %201 = vector.broadcast %200 : vector<8x1xf32> to vector<8x128xf32>
    %202 = vector.broadcast %114 : vector<1x128xf32> to vector<8x128xf32>
    %203 = arith.mulf %201, %202 : vector<8x128xf32>
    %204 = arith.addf %199, %203 : vector<8x128xf32>
    %205 = arith.mulf %204, %204 : vector<8x128xf32>
    %cst_72 = arith.constant dense<0.000000e+00> : vector<8xf32>
    %206 = vector.multi_reduction <add>, %205, %cst_72 [1] : vector<8x128xf32> to vector<8xf32>
    %207 = vector.shape_cast %206 : vector<8xf32> to vector<8x1xf32>
    %cst_73 = arith.constant 1.000000e-30 : f32
    %208 = vector.broadcast %cst_73 : f32 to vector<8x1xf32>
    %209 = arith.maximumf %207, %208 : vector<8x1xf32>
    %210 = math.rsqrt %209 : vector<8x1xf32>
    %211 = arith.mulf %209, %210 : vector<8x1xf32>
    %cst_74 = arith.constant 9.990000e-01 : f32
    %212 = vector.broadcast %cst_74 : f32 to vector<8x1xf32>
    %213 = arith.cmpf ogt, %211, %212 : vector<8x1xf32>
    %cst_75 = arith.constant 9.990000e-01 : f32
    %214 = vector.broadcast %cst_75 : f32 to vector<8x1xf32>
    %215 = arith.mulf %210, %214 : vector<8x1xf32>
    %cst_76 = arith.constant 1.000000e+00 : f32
    %216 = vector.broadcast %cst_76 : f32 to vector<8x1xf32>
    %217 = arith.select %213, %215, %216 : vector<8x1xi1>, vector<8x1xf32>
    %218 = vector.broadcast %217 : vector<8x1xf32> to vector<8x128xf32>
    %219 = arith.mulf %204, %218 : vector<8x128xf32>
    %c0_77 = arith.constant 0 : index
    %c0_78 = arith.constant 0 : index
    %220 = vector.load %arg7[%c0_77, %c0_78] : memref<8x128xf32, #tpu.memory_space<vmem>>, vector<8x128xf32>
    tpu.vector_store %arg7[%c0_77, %c0_78], %219 {strides = array<i32>} : memref<8x128xf32, #tpu.memory_space<vmem>>, vector<8x128xf32>,
    return
  }
  func.func @transform_0(%arg0: i32) -> (i32, i32) {
    %c0_i32 = arith.constant 0 : i32
    %c0_i32_0 = arith.constant 0 : i32
    return %arg0, %c0_i32 : i32, i32
  }
  func.func @transform_1(%arg0: i32) -> (i32, i32) {
    %c0_i32 = arith.constant 0 : i32
    %c0_i32_0 = arith.constant 0 : i32
    %c0_i32_1 = arith.constant 0 : i32
    return %c0_i32, %c0_i32_0 : i32, i32
  }
  func.func @transform_2(%arg0: i32) -> (i32, i32) {
    %c0_i32 = arith.constant 0 : i32
    %c0_i32_0 = arith.constant 0 : i32
    %c0_i32_1 = arith.constant 0 : i32
    return %c0_i32, %c0_i32_0 : i32, i32
  }
  func.func @transform_3(%arg0: i32) -> (i32, i32) {
    %c0_i32 = arith.constant 0 : i32
    %c0_i32_0 = arith.constant 0 : i32
    %c0_i32_1 = arith.constant 0 : i32
    return %c0_i32, %c0_i32_0 : i32, i32
  }
  func.func @transform_4(%arg0: i32) -> (i32, i32) {
    %c0_i32 = arith.constant 0 : i32
    %c0_i32_0 = arith.constant 0 : i32
    %c0_i32_1 = arith.constant 0 : i32
    return %c0_i32, %c0_i32_0 : i32, i32
  }
  func.func @transform_5(%arg0: i32) -> i32 {
    %c0_i32 = arith.constant 0 : i32
    %c0_i32_0 = arith.constant 0 : i32
    return %c0_i32 : i32
  }
  func.func @transform_6(%arg0: i32) -> (i32, i32) {
    %c0_i32 = arith.constant 0 : i32
    %c0_i32_0 = arith.constant 0 : i32
    return %arg0, %c0_i32 : i32, i32
  }
}

</mosaic_0001>

<bundles_post_ra>
// kernel: tpu_custom_call.1
= control target key start
LH: loop header
LB: loop body
LE: loop exit
PB: predicated region body
PF: predicated region fallthrough
CT: control target
= control target key end

     0   :  { %6 = vsyncpa [#allocation3], 0  ;;  %s440_s0 = inlined_call_operand.hbm [shape: f32[8,128], index: 0, kind: input, shape index: {}]   ;;  %s441_s1 = inlined_call_operand.hbm [shape: f32[16,128], index: 1, kind: output, shape index: {}]  }
   0x1   :  { %7 = vsyncpa [#allocation4], 0 }
   0x2   :  { %9 = vsyncpa [#allocation4 + $0x1], 0  ;;  %s356_s6 = smov 0   ;;  %s358_s7 = smov 0  }
   0x3   :  { %s360_s8 = smov 0   ;;  %s362_s9 = smov 0  }
   0x4 LB: > { %s377_s10 = sadd.s32 4294967295, %s343_s9   ;;  %s187_s11 = sadd.s32 4294967294, %s343_s9   ;;  %s343_s9 = sphi %s362_s9, %s447_s9   ;;  %s339_s8 = sphi %s360_s8, %s446_s8   ;;  %s335_s7 = sphi %s358_s7, %s445_s7   ;;  %s331_s6 = sphi %s356_s6, %s444_s6  }
   0x5   : > { %s381_s12 = sadd.s32 1, %s343_s9   ;;  %s43_s13 = sadd.s32 1, %s339_s8 }
   0x6   : > { %s40_s14 = ssub.s32 %s343_s9, %s381_s12  ;;  %p53_p0 = scmp.ne.s32.totalorder %s339_s8, %s335_s7 }
   0x7   : > { %p41_p1 = scmp.eq.s32.totalorder %s40_s14, 0  ;;  %p54_p2 = scmp.eq.s32.totalorder %s377_s10, 1 }
   0x8   : > { %p59_p3 = scmp.ne.s32.totalorder %s335_s7, %s331_s6  ;;  %p60_p4 = scmp.eq.s32.totalorder %s187_s11, 1 }
   0x9   : > { %s392_s15 = scalar_select %p41_p1, %s339_s8, %s43_s13  }
   0xa   : > { %p394_p5 = por %p54_p2, %p53_p0  ;;  %p398_p6 = por %p60_p4, %p59_p3 }
   0xb   : > { %p188_p7 = scmp.ge.s32.totalorder %s343_s9, 1  ;;  %p67_p8 = scmp.lt.s32.totalorder %s343_s9, 3 }
   0xc   : > { %p211_p9 = scmp.eq.s32.totalorder %s377_s10, 0  ;;  %s79_s20 = sshll.u32 %s440_s0, 4  ;;  %s80_s20 = int_to_ptr.hbm [resolvable:$true] %s79_s20 }
   0xd   : > { %p68_p10 = pnand %p188_p7, %p67_p8  ;;  %s345_s21 = smov [#allocation2]  }
   0xe   : > { %s81_s22 = sshll.u32 %s345_s21, 4  ;;  %s82_s22 = int_to_ptr.vmem [resolvable:$true] %s81_s22 }
   0xf   : > { %p203_p11 = pneg %p68_p10  ;;  %94 = sbr.rel (%p68_p10) target bundleno = 37 (0x25), region = 24 }
  0x11   : > { %p204_p12 = pnand %p211_p9, %p203_p11 }
  0x13   : > { %206 = dma.hbm_to_vmem [thread:$0]  (!%p204_p12), %s80_s20, 128, %s82_s22, [#allocation3]  }
  0x14   : > { %322 = dma.done.wait (%p211_p9), [#allocation3], 128  }
  0x15   : > { %324 = vsyncadd (%p211_p9), [#allocation3], 4294967168  ;;  %s107_s23 = sand.u32 1, %s335_s7   ;;  %s194_s24 = sshll.u32 %s377_s10, 3  ;;  %v110_v0 = vld [vmem:[#allocation2] sm:$0xff] }
  0x16   : > { %s192_s25 = sshll.u32 %s107_s23, 3  ;;  %s123_s28 = scalar_lea.hbm %s441_s1, %s194_s24 }
  0x17   : > { %s109_s29 = scalar_lea.vmem [#allocation5], %s192_s25  ;;  %s127_s2 = sshll.u32 %s123_s28, 4  ;;  %s128_s2 = int_to_ptr.hbm [resolvable:$true] %s127_s2 }
  0x18   : > { %s125_s30 = sshll.u32 %s109_s29, 4  ;;  %111 = vst [vmem:[%s109_s29] sm:$0xff] %v110_v0  ;;  %s113_s3 = scalar_lea.sflag [#allocation4], %s107_s23  ;;  %s126_s30 = int_to_ptr.vmem [resolvable:$true] %s125_s30 }
  0x19   : > { %s291_s4 = sshra.s32 %s128_s2, 4  ;;  %s297_s13 = scalar_lea.hbm %s441_s1, 16  ;;  %s292_s4 = int_to_ptr.hbm [resolvable:$true] %s291_s4 }
  0x1a   : > { %s293_s5 = scalar_lea.hbm %s292_s4, 8  ;;  %p298_p2 = scmp.lt.s32.totalorder %s292_s4, %s441_s1 }
  0x1b   : > { %p294_p13 = scmp.ne.s32.totalorder %s292_s4, %s293_s5  ;;  %p299_p3 = scmp.lt.s32.totalorder %s297_s13, %s293_s5 }
  0x1d   : > { %p295_p0 = pnand %p294_p13, %p394_p5  ;;  %p300_p4 = por %p299_p3, %p298_p2 }
  0x1f   : > { %p296_p1 = pneg %p295_p0 }
  0x21   : > { %p301_p7 = pnand %p300_p4, %p296_p1 }
  0x23   : > { %304 = shalt.err (!%p301_p7)
}
  0x24   : > { %201 = dma.vmem_to_hbm [thread:$0]  (%p394_p5), %s126_s30, 128, %s128_s2, %s113_s3  }
  0x25 PF: > { %p213_p8 = scmp.ge.s32.totalorder %s343_s9, 2  ;;  %s139_s19 = sand.u32 1, %s331_s6  }
  0x26   : > { %s140_s20 = scalar_lea.sflag [#allocation4], %s139_s19 }
  0x27   : > { %p208_p9 = pnand %p213_p8, %p398_p6 }
  0x29   : > { %p209_p10 = pneg %p208_p9 }
  0x2b   : > { %326 = dma.done.wait (%p209_p10), %s140_s20, 128  }
  0x2c   : > { %328 = vsyncadd (%p209_p10), %s140_s20, 4294967168  ;;  %p12_p11 = scmp.ge.s32.totalorder %s381_s12, 4   ;;  %s444_s6 = smov %s335_s7 }
  0x2d   : > { %s445_s7 = smov %s339_s8  ;;  %s446_s8 = smov %s392_s15 }
  0x2e   : > { %s447_s9 = smov %s381_s12  ;;  %14 = sbr.rel (!%p12_p11) target bundleno = 4 (0x4), region = 61 }
  0x33   :  { %146 = vsyncpa [#allocation3], 1 }
  0x34   :  { %148 = vsyncpa [#allocation3 + $0x1], 1 }
  0x35   :  { %149 = vsyncpa [#allocation4], 1 }
  0x36   :  { %151 = vsyncpa [#allocation4 + $0x1], 1 }

// kernel: _poincare_ffn_impl.1
= control target key start
LH: loop header
LB: loop body
LE: loop exit
PB: predicated region body
PF: predicated region fallthrough
CT: control target
= control target key end

     0   :  { %11 = vsyncpa [#allocation3], 0  ;;  %s958_s21 = smov 0   ;;  %s1049_s0 = inlined_call_operand.vmem [shape: f32[16,128], index: 0, kind: input, shape index: {}]   ;;  %s1050_s1 = inlined_call_operand.vmem [shape: bf16[128,128], index: 1, kind: input, shape index: {}]   ;;  %s1051_s2 = inlined_call_operand.vmem [shape: f32[1,128], index: 2, kind: input, shape index: {}]   ;;  %s1052_s3 = inlined_call_operand.vmem [shape: bf16[128,128], index: 3, kind: input, shape index: {}]   ;;  %s1053_s4 = inlined_call_operand.vmem [shape: f32[1,128], index: 4, kind: input, shape index: {}]   ;;  %s1054_s5 = inlined_call_operand.vmem [shape: f32[2], index: 5, kind: input, shape index: {}]   ;;  %s1055_s6 = inlined_call_operand.vmem [shape: f32[16,128], index: 6, kind: output, shape index: {}]  }
   0x1 LB: > { %s748_s22 = sadd.s32 4294967295, %s920_s21   ;;  %p750_p0 = scmp.ge.s32.totalorder %s920_s21, 1  ;;  %s920_s21 = sphi %s958_s21, %s17_s21  }
   0x2   : > { %p179_p1 = scmp.lt.s32.totalorder %s920_s21, 3  ;;  %s203_s25 = sshll.u32 %s1054_s5, 4  ;;  %s204_s25 = int_to_ptr.vmem [resolvable:$true] %s203_s25 }
   0x3   : > { %p850_p3 = scmp.eq.s32.totalorder %s748_s22, 0  ;;  %s922_s26 = smov [#allocation2]  }
   0x4   : > { %p180_p2 = pnand %p750_p0, %p179_p1 }
   0x6   : > { %p846_p4 = pneg %p180_p2  ;;  %223 = sbr.rel (%p180_p2) target bundleno = 1255 (0x4e7), region = 44 }
   0x8   : > { %p847_p5 = pnand %p850_p3, %p846_p4 }
   0xa   : > { %849 = dma.vmem_to_smem (!%p847_p5), %s204_s25, 16, %s922_s26, [#allocation3]  }
   0xb   : > { %915 = dma.done.wait (%p850_p3), [#allocation3], 16  }
   0xc   : > { %917 = vsyncadd (%p850_p3), [#allocation3], 4294967280 }
   0xd   : > { %230 = sfence }
   0xe   : > { %v833_v0 = vld [vmem:[%s1050_s1 + $0x38] sm:$0xff]  ;;  %p253_p6 = scmp.lt.s32.totalorder %s748_s22, 1  ;;  %v832_v1 = vld [vmem:[%s1050_s1 + $0x30] sm:$0xff]  ;;  %v831_v2 = vld [vmem:[%s1050_s1 + $0x28] sm:$0xff]  ;;  %s282_s27 = sld [smem:[#allocation2]] }
   0xf   : > { %332 = vmatpush.bf16.msra.mxu0 %v833_v0  ;;  %v830_v5 = vld [vmem:[%s1050_s1 + $0x20] sm:$0xff]  ;;  %v829_v6 = vld [vmem:[%s1050_s1 + $0x18] sm:$0xff]  ;;  %v828_v7 = vld [vmem:[%s1050_s1 + $0x10] sm:$0xff]  ;;  %s790_s25 = sld [smem:[#allocation2 + $0x1]] }
  0x10   : > { %s1057_s22 = smov (!%p253_p6, %s748_s22), 1  ;;  %v827_v8 = vld [vmem:[%s1050_s1 + $0x8] sm:$0xff]  ;;  %v826_v9 = vld [vmem:[%s1050_s1] sm:$0xff] }
  0x11   : > { %s755_s7 = sshll.u32 %s1057_s22, 3 }
  0x12   : > { %s256_s10 = scalar_lea.vmem %s1049_s0, %s755_s7  ;;  %s260_s28 = scalar_lea.vmem %s1055_s6, %s755_s7 }
  0x13   : > { %333 = vmatpush.bf16.msra.mxu0 %v832_v1  ;;  %v261_v3 = vld [vmem:[%s256_s10] sm:$0xff] }
  0x14   : > { %v262_v4 = vmul.f32 %v261_v3, %v261_v3  ;;  %v283_v10 = vpack.c.bf16 %v261_v3, %v261_v3 }
  0x16   : > { %263 = vadd.xlane.f32.xlu0 %v262_v4 }
  0x17   : > { %334 = vmatpush.bf16.msra.mxu0 %v831_v2 }
  0x1b   : > { %335 = vmatpush.bf16.msra.mxu0 %v830_v5  ;;  %v861_v5 = vld [vmem:[%s1051_s2] ss:$0 sm:$0xff] }
  0x1f   : > { %336 = vmatpush.bf16.msra.mxu0 %v829_v6 }
  0x23   : > { %337 = vmatpush.bf16.msra.mxu0 %v828_v7 }
  0x27   : > { %338 = vmatpush.bf16.msra.mxu0 %v827_v8 }
  0x2b   : > { %339 = vmatpush.bf16.msra.mxu0 %v826_v9 }
  0x2e   : > { %340 = vmatmul.bf16.vlgmr.msra.gmra.mxu0 %v283_v10  ;;  %v428_v10 = vstv %s282_s27 }
  0x89   : > { %v264_v14 = vpop.xlane.xlu0 %263 }
  0x8a   : > { %v349_v15 = vmax.f32 %v264_v14, 1e-30  ;;  %v841_v14 = vld [vmem:[%s1052_s3 + $0x38] sm:$0xff] }
  0x8b   : > { %541 = vmatpush.bf16.msra.mxu1 %v841_v14 }
  0x8c   : > { %863 = vrsqrt.f32 %v349_v15  ;;  %vm357_vm0 = vweird.f32 %v349_v15 }
  0x92   : > { %v864_v16 = vpop.eup %863 }
  0x93   : > { %v352_v17 = vmul.f32 %v864_v16, %v349_v15  ;;  %vm358_vm1 = vweird.f32 %v864_v16 }
  0x94   : > { %vm359_vm2 = vmor %vm357_vm0, %vm358_vm1 }
  0x95   : > { %v353_v18 = vmul.f32 %v864_v16, %v352_v17 }
  0x97   : > { %v354_v19 = vmul.f32 0.5, %v353_v18 }
  0x99   : > { %v355_v20 = vsub.f32 1.5, %v354_v19 }
  0x9b   : > { %v356_v21 = vmul.f32 %v864_v16, %v355_v20 }
  0x9d   : > { %v360_v22 = vsel %vm359_vm2, %v864_v16, %v356_v21 }
  0x9e   : > { %v371_v23 = vmul.f32 %v360_v22, %v349_v15 }
  0xa0   : > { %v789_v24 = vclamps-f32 %v371_v23, 0.99999 }
  0xa2   : > { %v377_v25 = vsub.f32 1.0, %v789_v24  ;;  %v376_v37 = vadd.f32 1.0, %v789_v24 }
  0xa4   : > { %865 = vrcp.f32 %v377_v25  ;;  %vm383_vm3 = vweird.f32 %v377_v25  ;;  %v389_v30 = vand.u32 2147483648, %v377_v25  ;;  %v387_v32 = vand.u32 2147483647, %v377_v25 }
  0xa6   : > { %v390_v33 = vor.u32 1.1754944e-38, %v389_v30  ;;  %vm388_vm6 = vcmp.eq.f32.partialorder %v387_v32, 8.507059e+37 }
  0xaa   : > { %v866_v26 = vpop.eup %865 }
  0xab   : > { %v1001_v11 = vpop.f32.mrf.mxu0  ;;  %v379_v27 = vmul.f32 %v866_v26, %v377_v25  ;;  %vm384_vm4 = vweird.f32 %v866_v26 }
  0xac   : > { %v345_v12 = vmul.f32 %v1001_v11, %v1001_v11  ;;  %vm385_vm5 = vmor %vm383_vm3, %vm384_vm4 }
  0xad   : > { %v380_v28 = vsub.f32 1.0, %v379_v27 }
  0xae   : > { %346 = vadd.xlane.f32.xlu0 %v345_v12 }
  0xaf   : > { %v381_v29 = vmul.f32 %v866_v26, %v380_v28 }
  0xb1   : > { %v382_v31 = vadd.f32 %v866_v26, %v381_v29 }
  0xb3   : > { %v343_v13 = vpop.f32.mrf.mxu0  ;;  %v386_v34 = vsel %vm385_vm5, %v866_v26, %v382_v31 }
  0xb4   : > { %v391_v38 = vsel %vm388_vm6, %v390_v33, %v386_v34 }
  0xb5   : > { %v392_v39 = vmul.f32 %v391_v38, %v376_v37  ;;  %v839_v37 = vld [vmem:[%s1052_s3 + $0x28] sm:$0xff]  ;;  %v838_v38 = vld [vmem:[%s1052_s3 + $0x20] sm:$0xff] }
 0x121   : > { %v347_v35 = vpop.xlane.xlu0 %346 }
 0x122   : > { %v350_v36 = vmax.f32 %v347_v35, 1e-30  ;;  %vm348_vm10 = vcmp.eq.f32.partialorder %v347_v35, 0.0 }
 0x124   : > { %867 = vrsqrt.f32 %v350_v36  ;;  %vm367_vm8 = vweird.f32 %v350_v36 }
 0x125   : > { %869 = vlog2.f32 %v392_v39  ;;  %v837_v39 = vld [vmem:[%s1052_s3 + $0x18] sm:$0xff] }
 0x12a   : > { %v868_v40 = vpop.eup %867 }
 0x12b   : > { %v362_v41 = vmul.f32 %v868_v40, %v350_v36  ;;  %v870_v44 = vpop.eup %869  ;;  %vm368_vm7 = vweird.f32 %v868_v40 }
 0x12c   : > { %v394_v47 = vmul.f32 0.6931472, %v870_v44  ;;  %vm369_vm9 = vmor %vm367_vm8, %vm368_vm7 }
 0x12d   : > { %v363_v42 = vmul.f32 %v868_v40, %v362_v41  ;;  %v835_v41 = vld [vmem:[%s1052_s3 + $0x8] sm:$0xff] }
 0x12e   : > { %v395_v50 = vmul.f32 0.5, %v394_v47 }
 0x12f   : > { %v364_v43 = vmul.f32 0.5, %v363_v42  ;;  %v834_v42 = vld [vmem:[%s1052_s3] sm:$0xff] }
 0x131   : > { %v365_v45 = vsub.f32 1.5, %v364_v43 }
 0x133   : > { %v366_v46 = vmul.f32 %v868_v40, %v365_v45 }
 0x135   : > { %v370_v48 = vsel %vm369_vm9, %v868_v40, %v366_v46  ;;  %v836_v40 = vld [vmem:[%s1052_s3 + $0x10] sm:$0xff] }
 0x136   : > { %v372_v49 = vmul.f32 %v370_v48, %v350_v36  ;;  %v840_v36 = vld [vmem:[%s1052_s3 + $0x30] sm:$0xff] }
 0x137   : > { %542 = vmatpush.bf16.msra.mxu1 %v840_v36 }
 0x138   : > { %v373_v51 = vmul.f32 %v372_v49, %v360_v22 }
 0x13a   : > { %v396_v52 = vmul.f32 %v395_v50, %v373_v51 }
 0x13b   : > { %543 = vmatpush.bf16.msra.mxu1 %v839_v37 }
 0x13c   : > { %871 = vtanh.f32 %v396_v52 }
 0x13f   : > { %544 = vmatpush.bf16.msra.mxu1 %v838_v38 }
 0x142   : > { %v872_v53 = vpop.eup %871 }
 0x143   : > { %v398_v54 = vmul.f32 %v872_v53, %v370_v48  ;;  %545 = vmatpush.bf16.msra.mxu1 %v837_v39 }
 0x145   : > { %v399_v55 = vsel %vm348_vm10, 0.0, %v398_v54 }
 0x146   : > { %v401_v56 = vmul.f32 %v399_v55, %v399_v55  ;;  %v400_v4 = vmul.f32 %v399_v55, %v1001_v11 }
 0x147   : > { %546 = vmatpush.bf16.msra.mxu1 %v836_v40 }
 0x148   : > { %v402_v57 = vmul.f32 %v401_v56, %v347_v35 }
 0x14a   : > { %v403_v58 = vmax.f32 %v402_v57, 1e-30 }
 0x14b   : > { %547 = vmatpush.bf16.msra.mxu1 %v835_v41 }
 0x14c   : > { %873 = vrsqrt.f32 %v403_v58  ;;  %vm410_vm12 = vweird.f32 %v403_v58 }
 0x14f   : > { %548 = vmatpush.bf16.msra.mxu1 %v834_v42 }
 0x152   : > { %v874_v59 = vpop.eup %873 }
 0x153   : > { %v405_v60 = vmul.f32 %v874_v59, %v403_v58  ;;  %vm411_vm11 = vweird.f32 %v874_v59 }
 0x154   : > { %vm412_vm13 = vmor %vm410_vm12, %vm411_vm11 }
 0x155   : > { %v406_v61 = vmul.f32 %v874_v59, %v405_v60 }
 0x157   : > { %v407_v62 = vmul.f32 0.5, %v406_v61 }
 0x159   : > { %v408_v63 = vsub.f32 1.5, %v407_v62 }
 0x15b   : > { %v409_v0 = vmul.f32 %v874_v59, %v408_v63 }
 0x15d   : > { %v413_v1 = vsel %vm412_vm13, %v874_v59, %v409_v0 }
 0x15e   : > { %v414_v2 = vmul.f32 %v413_v1, %v403_v58  ;;  %v416_v3 = vmul.f32 0.999, %v413_v1 }
 0x160   : > { %vm415_vm14 = vcmp.gt.f32.partialorder %v414_v2, 0.999 }
 0x161   : > { %v417_v6 = vsel %vm415_vm14, %v416_v3, 1.0  ;;  %v419_v7 = vsel %vm415_vm14, 0.998001, %v402_v57 }
 0x162   : > { %v418_v8 = vmul.f32 %v417_v6, %v400_v4  ;;  %v431_v15 = vmul.f32 %v428_v10, %v419_v7  ;;  %v430_v26 = vsub.f32 1.0, %v419_v7 }
 0x164   : > { %v423_v9 = vmul.f32 %v861_v5, %v418_v8 }
 0x166   : > { %424 = vadd.xlane.f32.xlu1 %v423_v9 }
 0x1d9   : > { %v425_v12 = vpop.xlane.xlu1 %424 }
 0x1da   : > { %v426_v13 = vmul.f32 2.0, %v425_v12 }
 0x1dc   : > { %v427_v11 = vadd.f32 1.0, %v426_v13 }
 0x1de   : > { %v432_v16 = vadd.f32 %v431_v15, %v427_v11  ;;  %v429_v27 = vadd.f32 %v428_v10, %v427_v11 }
 0x1e0   : > { %v433_v17 = vmax.f32 %v432_v16, 1e-15 }
 0x1e2   : > { %875 = vrcp.f32 %v433_v17  ;;  %v445_v21 = vand.u32 2147483648, %v433_v17  ;;  %v443_v23 = vand.u32 2147483647, %v433_v17  ;;  %vm439_vm0 = vweird.f32 %v433_v17 }
 0x1e4   : > { %v446_v25 = vor.u32 1.1754944e-38, %v445_v21  ;;  %vm444_vm2 = vcmp.eq.f32.partialorder %v443_v23, 8.507059e+37 }
 0x1e8   : > { %v876_v18 = vpop.eup %875 }
 0x1e9   : > { %v435_v19 = vmul.f32 %v876_v18, %v433_v17  ;;  %vm440_vm15 = vweird.f32 %v876_v18 }
 0x1ea   : > { %vm441_vm1 = vmor %vm439_vm0, %vm440_vm15 }
 0x1eb   : > { %v436_v20 = vsub.f32 1.0, %v435_v19 }
 0x1ed   : > { %v437_v22 = vmul.f32 %v876_v18, %v436_v20 }
 0x1ef   : > { %v438_v24 = vadd.f32 %v876_v18, %v437_v22 }
 0x1f1   : > { %v442_v28 = vsel %vm441_vm1, %v876_v18, %v438_v24 }
 0x1f2   : > { %v447_v29 = vsel %vm444_vm2, %v446_v25, %v442_v28 }
 0x1f3   : > { %v449_v30 = vmul.f32 %v447_v29, %v429_v27  ;;  %v451_v31 = vmul.f32 %v447_v29, %v430_v26 }
 0x1f5   : > { %v450_v32 = vmul.f32 %v449_v30, %v418_v8  ;;  %v452_v33 = vmul.f32 %v861_v5, %v451_v31 }
 0x1f7   : > { %v453_v34 = vadd.f32 %v452_v33, %v450_v32 }
 0x1f9   : > { %v454_v35 = vmul.f32 %v453_v34, %v453_v34 }
 0x1fb   : > { %455 = vadd.xlane.f32.xlu1 %v454_v35 }
 0x26e   : > { %v456_v43 = vpop.xlane.xlu1 %455 }
 0x26f   : > { %v457_v44 = vmax.f32 %v456_v43, 1e-30 }
 0x271   : > { %877 = vrsqrt.f32 %v457_v44  ;;  %vm464_vm4 = vweird.f32 %v457_v44 }
 0x277   : > { %v878_v45 = vpop.eup %877 }
 0x278   : > { %v459_v46 = vmul.f32 %v878_v45, %v457_v44  ;;  %vm465_vm3 = vweird.f32 %v878_v45 }
 0x279   : > { %vm466_vm5 = vmor %vm464_vm4, %vm465_vm3 }
 0x27a   : > { %v460_v47 = vmul.f32 %v878_v45, %v459_v46 }
 0x27c   : > { %v461_v48 = vmul.f32 0.5, %v460_v47 }
 0x27e   : > { %v462_v49 = vsub.f32 1.5, %v461_v48 }
 0x280   : > { %v463_v50 = vmul.f32 %v878_v45, %v462_v49 }
 0x282   : > { %v467_v51 = vsel %vm466_vm5, %v878_v45, %v463_v50 }
 0x283   : > { %v468_v52 = vmul.f32 %v467_v51, %v457_v44  ;;  %v470_v53 = vmul.f32 0.999, %v467_v51  ;;  %v862_v51 = vld [vmem:[%s1053_s4] ss:$0 sm:$0xff] }
 0x285   : > { %vm469_vm6 = vcmp.gt.f32.partialorder %v468_v52, 0.999 }
 0x286   : > { %v471_v54 = vsel %vm469_vm6, %v470_v53, 1.0  ;;  %v473_v55 = vsel %vm469_vm6, 0.998001, %v456_v43 }
 0x287   : > { %v472_v56 = vmul.f32 %v471_v54, %v453_v34  ;;  %v558_v61 = vmax.f32 %v473_v55, 1e-30 }
 0x289   : > { %v492_v57 = vpack.c.bf16 %v472_v56, %v472_v56  ;;  %879 = vrsqrt.f32 %v558_v61  ;;  %vm566_vm8 = vweird.f32 %v558_v61  ;;  %v637_v56 = vstv %s790_s25 }
 0x28b   : > { %549 = vmatmul.bf16.vlgmr.msra.gmra.mxu1 %v492_v57 }
 0x28f   : > { %v880_v62 = vpop.eup %879 }
 0x290   : > { %v561_v63 = vmul.f32 %v880_v62, %v558_v61  ;;  %vm567_vm7 = vweird.f32 %v880_v62 }
 0x291   : > { %vm568_vm9 = vmor %vm566_vm8, %vm567_vm7 }
 0x292   : > { %v562_v0 = vmul.f32 %v880_v62, %v561_v63 }
 0x294   : > { %v563_v1 = vmul.f32 0.5, %v562_v0 }
 0x296   : > { %v564_v2 = vsub.f32 1.5, %v563_v1 }
 0x298   : > { %v565_v3 = vmul.f32 %v880_v62, %v564_v2 }
 0x29a   : > { %v569_v4 = vsel %vm568_vm9, %v880_v62, %v565_v3 }
 0x29b   : > { %v580_v5 = vmul.f32 %v569_v4, %v558_v61 }
 0x29d   : > { %v823_v6 = vclamps-f32 %v580_v5, 0.99999 }
 0x29f   : > { %v586_v7 = vsub.f32 1.0, %v823_v6  ;;  %v585_v20 = vadd.f32 1.0, %v823_v6 }
 0x2a1   : > { %881 = vrcp.f32 %v586_v7  ;;  %v598_v14 = vand.u32 2147483648, %v586_v7  ;;  %vm592_vm11 = vweird.f32 %v586_v7  ;;  %v596_v15 = vand.u32 2147483647, %v586_v7 }
 0x2a3   : > { %v599_v17 = vor.u32 1.1754944e-38, %v598_v14  ;;  %vm597_vm13 = vcmp.eq.f32.partialorder %v596_v15, 8.507059e+37 }
 0x2a7   : > { %v882_v8 = vpop.eup %881 }
 0x2a8   : > { %v588_v9 = vmul.f32 %v882_v8, %v586_v7  ;;  %vm593_vm10 = vweird.f32 %v882_v8 }
 0x2a9   : > { %vm594_vm12 = vmor %vm592_vm11, %vm593_vm10 }
 0x2aa   : > { %v589_v10 = vsub.f32 1.0, %v588_v9 }
 0x2ac   : > { %v590_v12 = vmul.f32 %v882_v8, %v589_v10 }
 0x2ae   : > { %v591_v13 = vadd.f32 %v882_v8, %v590_v12 }
 0x2b0   : > { %v595_v11 = vsel %vm594_vm12, %v882_v8, %v591_v13 }
 0x2b1   : > { %v600_v19 = vsel %vm597_vm13, %v599_v17, %v595_v11 }
 0x2b2   : > { %v601_v21 = vmul.f32 %v600_v19, %v585_v20 }
 0x308   : > { %v1033_v58 = vpop.f32.mrf.mxu1 }
 0x309   : > { %v554_v59 = vmul.f32 %v1033_v58, %v1033_v58 }
 0x30b   : > { %555 = vadd.xlane.f32.xlu2 %v554_v59 }
 0x310   : > { %v552_v60 = vpop.f32.mrf.mxu1 }
 0x37e   : > { %v556_v16 = vpop.xlane.xlu2 %555 }
 0x37f   : > { %v559_v18 = vmax.f32 %v556_v16, 1e-30  ;;  %vm557_vm1 = vcmp.eq.f32.partialorder %v556_v16, 0.0 }
 0x381   : > { %883 = vrsqrt.f32 %v559_v18  ;;  %vm576_vm15 = vweird.f32 %v559_v18 }
 0x382   : > { %885 = vlog2.f32 %v601_v21 }
 0x387   : > { %v884_v22 = vpop.eup %883 }
 0x388   : > { %v571_v23 = vmul.f32 %v884_v22, %v559_v18  ;;  %v886_v26 = vpop.eup %885  ;;  %vm577_vm14 = vweird.f32 %v884_v22 }
 0x389   : > { %v603_v29 = vmul.f32 0.6931472, %v886_v26  ;;  %vm578_vm0 = vmor %vm576_vm15, %vm577_vm14 }
 0x38a   : > { %v572_v24 = vmul.f32 %v884_v22, %v571_v23 }
 0x38b   : > { %v604_v32 = vmul.f32 0.5, %v603_v29 }
 0x38c   : > { %v573_v25 = vmul.f32 0.5, %v572_v24 }
 0x38e   : > { %v574_v27 = vsub.f32 1.5, %v573_v25 }
 0x390   : > { %v575_v28 = vmul.f32 %v884_v22, %v574_v27 }
 0x392   : > { %v579_v30 = vsel %vm578_vm0, %v884_v22, %v575_v28 }
 0x393   : > { %v581_v31 = vmul.f32 %v579_v30, %v559_v18 }
 0x395   : > { %v582_v33 = vmul.f32 %v581_v31, %v569_v4 }
 0x397   : > { %v605_v34 = vmul.f32 %v604_v32, %v582_v33 }
 0x399   : > { %887 = vtanh.f32 %v605_v34 }
 0x39f   : > { %v888_v35 = vpop.eup %887 }
 0x3a0   : > { %v607_v36 = vmul.f32 %v888_v35, %v579_v30 }
 0x3a2   : > { %v608_v37 = vsel %vm557_vm1, 0.0, %v607_v36 }
 0x3a3   : > { %v610_v38 = vmul.f32 %v608_v37, %v608_v37  ;;  %v609_v50 = vmul.f32 %v608_v37, %v1033_v58 }
 0x3a5   : > { %v611_v39 = vmul.f32 %v610_v38, %v556_v16 }
 0x3a7   : > { %v612_v40 = vmax.f32 %v611_v39, 1e-30 }
 0x3a9   : > { %889 = vrsqrt.f32 %v612_v40  ;;  %vm619_vm3 = vweird.f32 %v612_v40 }
 0x3af   : > { %v890_v41 = vpop.eup %889 }
 0x3b0   : > { %v614_v42 = vmul.f32 %v890_v41, %v612_v40  ;;  %vm620_vm2 = vweird.f32 %v890_v41 }
 0x3b1   : > { %vm621_vm4 = vmor %vm619_vm3, %vm620_vm2 }
 0x3b2   : > { %v615_v43 = vmul.f32 %v890_v41, %v614_v42 }
 0x3b4   : > { %v616_v44 = vmul.f32 0.5, %v615_v43 }
 0x3b6   : > { %v617_v45 = vsub.f32 1.5, %v616_v44 }
 0x3b8   : > { %v618_v46 = vmul.f32 %v890_v41, %v617_v45 }
 0x3ba   : > { %v622_v47 = vsel %vm621_vm4, %v890_v41, %v618_v46 }
 0x3bb   : > { %v623_v48 = vmul.f32 %v622_v47, %v612_v40  ;;  %v625_v49 = vmul.f32 0.999, %v622_v47 }
 0x3bd   : > { %vm624_vm5 = vcmp.gt.f32.partialorder %v623_v48, 0.999 }
 0x3be   : > { %v626_v52 = vsel %vm624_vm5, %v625_v49, 1.0  ;;  %v628_v53 = vsel %vm624_vm5, 0.998001, %v611_v39 }
 0x3bf   : > { %v627_v54 = vmul.f32 %v626_v52, %v609_v50  ;;  %v640_v60 = vmul.f32 %v637_v56, %v628_v53  ;;  %v639_v7 = vsub.f32 1.0, %v628_v53 }
 0x3c1   : > { %v632_v55 = vmul.f32 %v862_v51, %v627_v54 }
 0x3c3   : > { %633 = vadd.xlane.f32.xlu2 %v632_v55 }
 0x436   : > { %v634_v57 = vpop.xlane.xlu2 %633 }
 0x437   : > { %v635_v59 = vmul.f32 2.0, %v634_v57 }
 0x439   : > { %v636_v61 = vadd.f32 1.0, %v635_v59 }
 0x43b   : > { %v641_v62 = vadd.f32 %v640_v60, %v636_v61  ;;  %v638_v8 = vadd.f32 %v637_v56, %v636_v61 }
 0x43d   : > { %v642_v63 = vmax.f32 %v641_v62, 1e-15 }
 0x43f   : > { %891 = vrcp.f32 %v642_v63  ;;  %v654_v2 = vand.u32 2147483648, %v642_v63  ;;  %v652_v4 = vand.u32 2147483647, %v642_v63  ;;  %vm648_vm7 = vweird.f32 %v642_v63 }
 0x441   : > { %v655_v6 = vor.u32 1.1754944e-38, %v654_v2  ;;  %vm653_vm9 = vcmp.eq.f32.partialorder %v652_v4, 8.507059e+37 }
 0x445   : > { %v892_v58 = vpop.eup %891 }
 0x446   : > { %v644_v0 = vmul.f32 %v892_v58, %v642_v63  ;;  %vm649_vm6 = vweird.f32 %v892_v58 }
 0x447   : > { %vm650_vm8 = vmor %vm648_vm7, %vm649_vm6 }
 0x448   : > { %v645_v1 = vsub.f32 1.0, %v644_v0 }
 0x44a   : > { %v646_v3 = vmul.f32 %v892_v58, %v645_v1 }
 0x44c   : > { %v647_v5 = vadd.f32 %v892_v58, %v646_v3 }
 0x44e   : > { %v651_v9 = vsel %vm650_vm8, %v892_v58, %v647_v5 }
 0x44f   : > { %v656_v10 = vsel %vm653_vm9, %v655_v6, %v651_v9 }
 0x450   : > { %v658_v12 = vmul.f32 %v656_v10, %v638_v8  ;;  %v660_v13 = vmul.f32 %v656_v10, %v639_v7 }
 0x452   : > { %v659_v14 = vmul.f32 %v658_v12, %v627_v54  ;;  %v661_v15 = vmul.f32 %v862_v51, %v660_v13 }
 0x454   : > { %v662_v11 = vadd.f32 %v661_v15, %v659_v14 }
 0x456   : > { %v663_v16 = vmul.f32 %v662_v11, %v662_v11 }
 0x458   : > { %664 = vadd.xlane.f32.xlu0 %v663_v16 }
 0x4cb   : > { %v665_v17 = vpop.xlane.xlu0 %664 }
 0x4cc   : > { %v666_v18 = vmax.f32 %v665_v17, 1e-30 }
 0x4ce   : > { %893 = vrsqrt.f32 %v666_v18  ;;  %vm673_vm11 = vweird.f32 %v666_v18 }
 0x4d4   : > { %v894_v19 = vpop.eup %893 }
 0x4d5   : > { %v668_v20 = vmul.f32 %v894_v19, %v666_v18  ;;  %vm674_vm10 = vweird.f32 %v894_v19 }
 0x4d6   : > { %vm675_vm12 = vmor %vm673_vm11, %vm674_vm10 }
 0x4d7   : > { %v669_v21 = vmul.f32 %v894_v19, %v668_v20 }
 0x4d9   : > { %v670_v22 = vmul.f32 0.5, %v669_v21 }
 0x4db   : > { %v671_v23 = vsub.f32 1.5, %v670_v22 }
 0x4dd   : > { %v672_v24 = vmul.f32 %v894_v19, %v671_v23 }
 0x4df   : > { %v676_v25 = vsel %vm675_vm12, %v894_v19, %v672_v24 }
 0x4e0   : > { %v677_v26 = vmul.f32 %v676_v25, %v666_v18  ;;  %v679_v27 = vmul.f32 0.999, %v676_v25 }
 0x4e2   : > { %vm678_vm13 = vcmp.gt.f32.partialorder %v677_v26, 0.999 }
 0x4e3   : > { %v680_v28 = vsel %vm678_vm13, %v679_v27, 1.0 }
 0x4e4   : > { %v681_v29 = vmul.f32 %v680_v28, %v662_v11 }
 0x4e6   : > { %682 = vst [vmem:[%s260_s28] sm:$0xff] %v681_v29 }
 0x4e7 PF: > { %s17_s21 = sadd.s32 1, %s920_s21  }
 0x4e8   : > { %p14_p7 = scmp.ge.s32.totalorder %s17_s21, 4  }
 0x4ea   :  { %16 = sbr.rel (!%p14_p7) target bundleno = 1 (0x1), region = 79 }
 0x4ef   :  { %702 = vsyncpa [#allocation3], 1 }
 0x4f0   :  { %704 = vsyncpa [#allocation3 + $0x1], 1 }

</bundles_post_ra>
